<compile_context>
chip_gen: v7x
topology: tpu7x:2x2x1
jax: 0.10.0
libtpu: 0.0.40
codegen_flags: <defaults>
</compile_context>

<pallas_src>
import math

import jax
import jax.numpy as jnp
from jax.experimental import pallas as pl
from jax.experimental.pallas import tpu as pltpu

_MIB = 1024 * 1024


def _tanh_glu_split_kernel(x_in_ref, x_gate_ref, o_ref):
    """Fast path: the two chunks arrive as separate lane-dense VMEM tiles."""
    a = x_in_ref[...].astype(jnp.float32)
    g = x_gate_ref[...].astype(jnp.float32)
    o_ref[...] = (jnp.tanh(a) * jax.nn.sigmoid(g)).astype(o_ref.dtype)


def _tanh_glu_fused_kernel(x_ref, o_ref):
    """Fallback: one (tl, 2M) tile, split in-kernel (M not 128-aligned)."""
    m = o_ref.shape[-1]
    a = x_ref[:, :m].astype(jnp.float32)
    g = x_ref[:, m:].astype(jnp.float32)
    o_ref[...] = (jnp.tanh(a) * jax.nn.sigmoid(g)).astype(o_ref.dtype)


def _vmem_caps():
    """Returns (per-step resident tile budget, scoped vmem limit) in bytes."""
    try:
        cap = int(pltpu.get_tpu_info().vmem_capacity_bytes)
    except Exception:
        cap = 64 * _MIB  # conservative (v7x-sized) default
    budget = min(cap // 6, 16 * _MIB)  # double-buffered in + gate + out tiles
    limit = min(cap // 2, 64 * _MIB)   # raises v5e/v6e scoped defaults, safe on v7x
    return budget, limit


def _round_down(x, m):
    return (x // m) * m


def _round_up(x, m):
    return ((x + m - 1) // m) * m


def _largest_aligned_divisor(m, cap):
    """Largest multiple of 128 that divides m (m % 128 == 0) and is <= cap."""
    k_total = m // 128
    k_cap = max(1, min(k_total, cap // 128))
    for k in range(k_cap, 0, -1):
        if k_total % k == 0:
            return 128 * k
    return 128


def _pick_row_tile(n_rows, bytes_per_row, budget, sub, want_split):
    """Sublane-aligned row tile from a VMEM byte budget."""
    tl = max(1, budget // max(1, bytes_per_row))
    tl = max(sub, _round_down(tl, sub))
    if tl < n_rows:
        return tl
    if want_split and n_rows >= 2 * sub:
        half = _round_up(-(-n_rows // 2), sub)  # ceil(n/2), sublane-aligned
        if half < n_rows:
            return half                         # >= 2 grid blocks (megacore / pipelining)
    return n_rows


def tanh_glu(x, dim=-1):
    """Pallas TPU implementation of TanhGLU(dim)(x)."""
    ndim = x.ndim
    dim = dim % ndim
    two_h = x.shape[dim]
    assert two_h % 2 == 0, "TanhGLU requires an even size along the split dim"
    h = two_h // 2

    lead = x.shape[:dim]
    trail = x.shape[dim + 1:]
    n_rows = math.prod(lead)   # 1 if lead is empty
    t = math.prod(trail)       # 1 if trail is empty
    m = h * t                  # contiguous size of each chunk per row
    out_shape = lead + (h,) + trail

    # Free (row-major) reshape: chunk 0 -> columns [0, m), chunk 1 -> columns [m, 2m).
    x2 = x.reshape(n_rows, 2 * m)

    itemsize = jnp.dtype(x.dtype).itemsize
    sub = max(8, 32 // itemsize)  # sublane multiple: 8 f32 / 16 bf16 / 32 int8
    budget, vmem_limit = _vmem_caps()
    big = n_rows * m * itemsize >= 4 * _MIB

    cost = pl.CostEstimate(
        flops=n_rows * m,                         # one multiply per output element
        transcendentals=2 * n_rows * m,           # tanh + sigmoid per output element
        bytes_accessed=3 * n_rows * m * itemsize, # read 2m, write m per row
    )

    if m % 128 == 0:
        # ---- fast path: two lane-aligned refs onto the same array ----------------
        row_target = min(max(sub, n_rows), 512)
        tc_cap = max(128, budget // (6 * itemsize * row_target))
        tc = _largest_aligned_divisor(m, min(m, tc_cap))
        n_col_blocks = m // tc
        tl = _pick_row_tile(
            n_rows, 6 * tc * itemsize, budget, sub,
            want_split=big and n_col_blocks == 1)
        gate_off = n_col_blocks  # gate half starts n_col_blocks column-blocks later
        out2 = pl.pallas_call(
            _tanh_glu_split_kernel,
            out_shape=jax.ShapeDtypeStruct((n_rows, m), x.dtype),
            grid=(pl.cdiv(n_rows, tl), n_col_blocks),
            in_specs=[
                pl.BlockSpec((tl, tc), lambda i, j: (i, j)),              # x_in half
                pl.BlockSpec((tl, tc), lambda i, j: (i, j + gate_off)),   # x_gate half
            ],
            out_specs=pl.BlockSpec((tl, tc), lambda i, j: (i, j)),
            compiler_params=pltpu.CompilerParams(
                dimension_semantics=("parallel", "parallel"),
                vmem_limit_bytes=vmem_limit,
            ),
            cost_estimate=cost,
        )(x2, x2)
    else:
        # ---- fallback: chunk width not lane-aligned (typically small M) ----------
        # TODO(synk): huge non-128-aligned chunk widths would need column padding or
        # element-offset blocks; only row tiling is applied here.
        tl = _pick_row_tile(n_rows, 6 * m * itemsize, budget, sub, want_split=big)
        out2 = pl.pallas_call(
            _tanh_glu_fused_kernel,
            out_shape=jax.ShapeDtypeStruct((n_rows, m), x.dtype),
            grid=(pl.cdiv(n_rows, tl),),
            in_specs=[pl.BlockSpec((tl, 2 * m), lambda i: (i, 0))],
            out_specs=pl.BlockSpec((tl, m), lambda i: (i, 0)),
            compiler_params=pltpu.CompilerParams(
                dimension_semantics=("parallel",),
                vmem_limit_bytes=vmem_limit,
            ),
            cost_estimate=cost,
        )(x2)

    return out2.reshape(out_shape)


if __name__ == "__main__":
    key = jax.random.PRNGKey(0)
    k1, k2 = jax.random.split(key)

    # Example 1: sequence-style input (batch=2, seq=8, hidden=64), split on last dim
    # (exercises the fallback path: M = 32, not lane-aligned).
    x_seq = jax.random.normal(k1, (2, 8, 64), dtype=jnp.float32)
    y_seq = jax.block_until_ready(tanh_glu(x_seq, dim=-1))
    ref_seq = jnp.tanh(x_seq[..., :32]) * jax.nn.sigmoid(x_seq[..., 32:])
    assert y_seq.shape == (2, 8, 32)
    assert jnp.allclose(y_seq, ref_seq, atol=1e-5, rtol=1e-5)

    # Example 2: NCHW conv-style input (batch=2, channels=4, 16x16), split on dim=1
    # (exercises the lane-aligned two-ref fast path: M = 2*16*16 = 512, no transpose).
    x_img = jax.random.normal(k2, (2, 4, 16, 16), dtype=jnp.float32)
    y_img = jax.block_until_ready(tanh_glu(x_img, dim=1))
    ref_img = jnp.tanh(x_img[:, :2]) * jax.nn.sigmoid(x_img[:, 2:])
    assert y_img.shape == (2, 2, 16, 16)
    assert jnp.allclose(y_img, ref_img, atol=1e-5, rtol=1e-5)

    print("KERNEL_OK")
</pallas_src>

<mosaic_0001>
module attributes {stable_mosaic.version = 11 : i64} {
  func.func @_tanh_glu_fused_kernel(%arg0: i32, %arg1: memref<16x64xf32, #tpu.memory_space<vmem>>, %arg2: memref<16x32xf32, #tpu.memory_space<vmem>>) attributes {dimension_semantics = [#tpu.dimension_semantics<parallel>], iteration_bounds = array<i64: 1>, scalar_prefetch = 0 : i64, scratch_operands = 0 : i64, tpu.core_type = #tpu.core_type<tc>, window_params = [{transform_indices = @transform_0, window_bounds = array<i64: 16, 64>}, {transform_indices = @transform_1, window_bounds = array<i64: 16, 32>}]} {
    %c0 = arith.constant 0 : index
    %c0_0 = arith.constant 0 : index
    %0 = vector.load %arg1[%c0, %c0_0] : memref<16x64xf32, #tpu.memory_space<vmem>>, vector<16x32xf32>
    %c0_1 = arith.constant 0 : index
    %c32 = arith.constant 32 : index
    %1 = vector.load %arg1[%c0_1, %c32] : memref<16x64xf32, #tpu.memory_space<vmem>>, vector<16x32xf32>
    %2 = math.tanh %0 : vector<16x32xf32>
    %3 = arith.negf %1 : vector<16x32xf32>
    %4 = math.exp %3 : vector<16x32xf32>
    %cst = arith.constant 1.000000e+00 : f32
    %5 = vector.broadcast %cst : f32 to vector<16x32xf32>
    %6 = arith.addf %5, %4 : vector<16x32xf32>
    %7 = arith.divf %5, %6 : vector<16x32xf32>
    %8 = arith.mulf %2, %7 : vector<16x32xf32>
    %c0_2 = arith.constant 0 : index
    %c0_3 = arith.constant 0 : index
    %9 = vector.load %arg2[%c0_2, %c0_3] : memref<16x32xf32, #tpu.memory_space<vmem>>, vector<16x32xf32>
    tpu.vector_store %arg2[%c0_2, %c0_3], %8 {strides = array<i32>} : memref<16x32xf32, #tpu.memory_space<vmem>>, vector<16x32xf32>,
    return
  }
  func.func @transform_0(%arg0: i32) -> (i32, i32) {
    %c0_i32 = arith.constant 0 : i32
    %c0_i32_0 = arith.constant 0 : i32
    return %arg0, %c0_i32 : i32, i32
  }
  func.func @transform_1(%arg0: i32) -> (i32, i32) {
    %c0_i32 = arith.constant 0 : i32
    %c0_i32_0 = arith.constant 0 : i32
    return %arg0, %c0_i32 : i32, i32
  }
}

</mosaic_0001>

<bundles_post_ra>
// kernel: tpu_custom_call.1
= control target key start
LH: loop header
LB: loop body
LE: loop exit
PB: predicated region body
PF: predicated region fallthrough
CT: control target
= control target key end

     0   :  { %6 = vsyncpa [#allocation3], 0  ;;  %s181_s0 = inlined_call_operand.hbm [shape: f32[16,64], index: 0, kind: input, shape index: {}]   ;;  %s182_s1 = inlined_call_operand.hbm [shape: f32[16,32], index: 1, kind: output, shape index: {}]  }
   0x1   :  { %7 = vsyncpa [#allocation4], 0  ;;  %s136_s6 = smov [#allocation2]   ;;  %s88_s10 = scalar_lea.hbm %s181_s0, 256 }
   0x2   :  { %s13_s7 = sshll.u32 %s136_s6, 4  ;;  %p89_p0 = scmp.ne.s32.totalorder %s181_s0, %s88_s10  ;;  %s14_s7 = int_to_ptr.vmem [resolvable:$true] %s13_s7 }
   0x3   :  { %p92_p1 = scmp.lt.u32.totalorder %s88_s10, %s181_s0 }
   0x5   :  { %p94_p2 = pnand %p92_p1, %p89_p0 }
   0x7   :  { %97 = shalt.err (!%p94_p2)
}
   0x8   :  { %s98_s15 = scalar_lea.vmem %s14_s7, 256  ;;  %p103_p4 = scmp.lt.s32.totalorder %s14_s7, %s14_s7 }
   0x9   :  { %p99_p3 = scmp.ne.s32.totalorder %s14_s7, %s98_s15  ;;  %p104_p5 = scmp.lt.s32.totalorder %s98_s15, %s98_s15 }
   0xb   :  { %p105_p6 = por %p104_p5, %p103_p4 }
   0xd   :  { %p106_p7 = pnand %p105_p6, %p99_p3 }
   0xf   :  { %109 = shalt.err (!%p106_p7)
}
  0x10   :  { %s137_s16 = smov 128   ;;  %s138_s17 = smov 8  }
  0x11   :  { %19 = dma.hbm_to_vmem [thread:$0]  %s181_s0, 256, %s14_s7, [#allocation3], %s137_s16, %s137_s16, %s138_s17  }
  0x12   :  { %132 = dma.done.wait [#allocation3], 256  }
  0x13   :  { %133 = vsyncadd [#allocation3], 4294967040  ;;  %v23_v0 = vld [vmem:[#allocation2] sm:$0xff]  ;;  %v24_v1 = vld [vmem:[#allocation2 + $0x8] sm:$0xff]  ;;  %s139_s20 = smov 96   ;;  %vm49_vm0 = vcmask 261120  }
  0x14   :  { %v69_v2 = vmul.f32 -1.442695, %v23_v0  ;;  %v70_v3 = vmul.f32 -1.442695, %v24_v1  ;;  %s140_s0 = smov [#allocation5]  }
  0x15   :  { %s57_s21 = sshll.u32 %s140_s0, 4  ;;  %s58_s21 = int_to_ptr.vmem [resolvable:$true] %s57_s21 }
  0x16   :  { %76 = vpow2.f32 %v69_v2  ;;  %s110_s22 = scalar_lea.vmem %s58_s21, 256  ;;  %p115_p9 = scmp.lt.s32.totalorder %s58_s21, %s58_s21 }
  0x17   :  { %78 = vpow2.f32 %v70_v3  ;;  %p111_p8 = scmp.ne.s32.totalorder %s58_s21, %s110_s22  ;;  %p116_p10 = scmp.lt.s32.totalorder %s110_s22, %s110_s22 }
  0x19   :  { %p117_p11 = por %p116_p10, %p115_p9 }
  0x1b   :  { %p118_p12 = pnand %p117_p11, %p111_p8 }
  0x20   :  { %v77_v4 = vpop.eup %76 }
  0x21   :  { %v79_v5 = vpop.eup %78  ;;  %v33_v6 = vadd.f32 1.0, %v77_v4 }
  0x22   :  { %v34_v7 = vadd.f32 1.0, %v79_v5 }
  0x23   :  { %80 = vrcp.f32 %v33_v6 }
  0x24   :  { %82 = vrcp.f32 %v34_v7 }
  0x25   :  { %84 = vtanh.f32 %v23_v0 }
  0x26   :  { %86 = vtanh.f32 %v24_v1 }
  0x2d   :  { %v81_v8 = vpop.eup %80 }
  0x2e   :  { %41 = vrot.lane.b32.xlu0 %v81_v8, %s139_s20  ;;  %v83_v9 = vpop.eup %82 }
  0x2f   :  { %v85_v10 = vpop.eup %84 }
  0x30   :  { %v87_v13 = vpop.eup %86 }
  0x32   :  { %43 = vrot.lane.b32.xlu0 %v83_v9, %s139_s20 }
  0xa0   :  { %v42_v11 = vpop.permute.xlu0 %41 }
  0xa1   :  { %v47_v12 = vmul.f32 %v85_v10, %v42_v11 }
  0xa3   :  { %50 = vst.msk [vmem:[#allocation5] sm:$0xff] %vm49_vm0, %v47_v12 }
  0xa4   :  { %v44_v14 = vpop.permute.xlu0 %43 }
  0xa5   :  { %v48_v15 = vmul.f32 %v87_v13, %v44_v14 }
  0xa7   :  { %51 = vst.msk [vmem:[#allocation5 + $0x8] sm:$0xff] %vm49_vm0, %v48_v15 }
  0xa8   :  { %121 = shalt.err (!%p118_p12)
}
  0xa9   :  { %s122_s25 = scalar_lea.hbm %s182_s1, 256 }
  0xaa   :  { %p123_p13 = scmp.ne.s32.totalorder %s182_s1, %s122_s25  ;;  %p126_p0 = scmp.lt.u32.totalorder %s122_s25, %s182_s1 }
  0xac   :  { %p128_p1 = pnand %p126_p0, %p123_p13 }
  0xae   :  { %131 = shalt.err (!%p128_p1)
}
  0xaf   :  { %63 = dma.vmem_to_hbm [thread:$0]  %s58_s21, 256, %s182_s1, [#allocation4], %s137_s16, %s137_s16, %s138_s17  }
  0xb0   :  { %134 = dma.done.wait [#allocation4], 256  }
  0xb1   :  { %135 = vsyncadd [#allocation4], 4294967040 }
  0xb2   :  { %67 = vsyncpa [#allocation3], 1 }
  0xb3   :  { %68 = vsyncpa [#allocation4], 1 }

</bundles_post_ra>
